<compile_context>
chip_gen: v5e
topology: v5e:2x2
jax: 0.10.0
libtpu: 0.0.40
codegen_flags: <defaults>
</compile_context>

<pallas_src>
import functools

import jax
import jax.numpy as jnp
from jax.experimental import pallas as pl
from jax.experimental.pallas import tpu as pltpu


# ---------------------------------------------------------------------------
# Pallas kernel: fused (folded-embedding select) + Linear1 + LeakyReLU
#                + Linear2 + Sigmoid, transposed / lane-dense.
# ---------------------------------------------------------------------------
def _disc_kernel(img_ref,     # (dim, TB)            bf16   batch along lanes
                 lab_ref,     # (1, TB)               int32
                 w1_img_ref,  # (hidden, dim)         bf16
                 w1e_ref,     # (hidden, n_classes)   f32    W1_emb @ emb_table.T
                 w2_ref,      # (hidden, 1)           f32
                 out_ref):    # (1, TB)               f32
    n_classes = w1e_ref.shape[1]
    tb = lab_ref.shape[1]

    # Linear1, image part: single bf16 MXU dot, f32 accumulation.   (hidden, TB)
    h = jnp.dot(w1_img_ref[...], img_ref[...], preferred_element_type=jnp.float32)

    # Linear1, label part: embedding already folded through W1 in the wrapper,
    # so this is a per-lane column select of w1e (VPU only, no MXU chain).
    lab = lab_ref[...]                                           # (1, TB) int32
    if n_classes <= 8:
        # Unrolled select chain (out-of-range labels -> zero, like one-hot).
        contrib = jnp.zeros((), jnp.float32)
        for c in range(n_classes):
            contrib = jnp.where(lab == c, w1e_ref[:, c:c + 1], contrib)
    else:
        # Fallback for many classes: small one-hot matmul against w1e.
        cls = jax.lax.broadcasted_iota(jnp.int32, (n_classes, tb), 0)
        oh = (lab == cls).astype(jnp.float32)
        contrib = jnp.dot(w1e_ref[...], oh, preferred_element_type=jnp.float32)
    h = h + contrib                                              # (hidden, TB) f32

    # LeakyReLU(0.2) on the VPU.  Dropout(0.3) is identity in the eval forward.
    # TODO(synk): training-mode dropout would need pltpu.prng_seed/prng_random_bits masking.
    h = jnp.where(h > 0, h, 0.2 * h)

    # Linear2 (hidden -> 1): VPU multiply + cross-sublane reduction instead of a
    # 1-column MXU matmul; result is already a lane-dense (1, TB) row.
    logit = jnp.sum(h * w2_ref[...], axis=0, keepdims=True)      # (1, TB) f32

    # Numerically stable sigmoid (exp goes to the EUP slot).
    e = jnp.exp(-jnp.abs(logit))
    sig = jnp.where(logit >= 0, 1.0 / (1.0 + e), e / (1.0 + e))
    out_ref[...] = sig.astype(out_ref.dtype)


# ---------------------------------------------------------------------------
# Batch-tile selection: lane-dense, VMEM-aware (v7x safe), >= 2 tiles when the
# batch is big enough to give the second v7x TensorCore work.
# ---------------------------------------------------------------------------
def _pick_batch_tile(B, dim, tb_req):
    tb = min(tb_req, pl.cdiv(B, 128) * 128)
    budget = 40 * 1024 * 1024                      # headroom under v7x's 64 MiB/TC
    per_lane = 2 * (2 * dim + 4 + 4)               # db'd bf16 img + i32 label + f32 out
    tb = max(128, min(tb, (budget // per_lane) // 128 * 128))
    if B >= 256 and pl.cdiv(B, tb) < 2:            # split for megacore (skip tiny B)
        tb = pl.cdiv(pl.cdiv(B, 2), 128) * 128
    return tb


# ---------------------------------------------------------------------------
# Wrapper: fold embedding through W1, lane-dense layout plumbing, pallas_call.
# ---------------------------------------------------------------------------
@functools.partial(jax.jit, static_argnames=("tb",))
def discriminator_moon_forward(img, labels, emb_table, w1, w2, *, tb=2048):
    """img: (B, ...) f32, labels: (B,) int, emb_table: (n_classes, label_dim) f32,
    w1: (hidden, dim + label_dim) f32 (PyTorch layout), w2: (1, hidden) f32.
    Returns (B, 1) f32."""
    B = img.shape[0]
    img2d = img.reshape(B, -1).astype(jnp.float32)               # img.view(B, -1)
    dim = img2d.shape[1]
    hidden, in_dim = w1.shape
    label_dim = in_dim - dim
    n_classes = emb_table.shape[0]
    assert emb_table.shape[1] == label_dim

    # Fold the embedding through W1 (tiny f32 matmul done once in the wrapper):
    # w1e[:, c] = W1_emb @ emb_table[c]  ->  per-class contribution to hidden.
    w1e = jnp.dot(w1[:, dim:], emb_table.astype(jnp.float32).T,
                  preferred_element_type=jnp.float32)            # (hidden, n_classes)

    tb = _pick_batch_tile(B, dim, tb)
    b_pad = pl.cdiv(B, tb) * tb
    g = b_pad // tb

    # Lane-dense streamed operands (single fused transpose+cast+pad per input).
    img_t = jnp.pad(img2d.T.astype(jnp.bfloat16), ((0, 0), (0, b_pad - B)))       # (dim, b_pad)
    lab2d = jnp.pad(labels.astype(jnp.int32)[None, :], ((0, 0), (0, b_pad - B)))  # (1, b_pad)

    w1_img = w1[:, :dim].astype(jnp.bfloat16)                    # (hidden, dim)
    w2_col = w2.reshape(hidden, 1).astype(jnp.float32)           # (hidden, 1)

    # VMEM budget: double-buffered streams + resident weights (+ generous slack).
    tile_bytes = 2 * tb * (2 * dim + 4 + 4)
    weight_bytes = 2 * (w1_img.size * 2 + w1e.size * 4 + w2_col.size * 4)
    vmem_limit = int(min(max(2 * (tile_bytes + weight_bytes), 4 << 20), 48 << 20))

    out = pl.pallas_call(
        _disc_kernel,
        out_shape=jax.ShapeDtypeStruct((1, b_pad), jnp.float32),
        grid=(g,),
        in_specs=[
            pl.BlockSpec((dim, tb), lambda i: (0, i)),        # streamed per batch tile
            pl.BlockSpec((1, tb), lambda i: (0, i)),          # streamed per batch tile
            pl.BlockSpec(w1_img.shape, lambda i: (0, 0)),     # resident weights
            pl.BlockSpec(w1e.shape, lambda i: (0, 0)),        # resident folded embedding
            pl.BlockSpec(w2_col.shape, lambda i: (0, 0)),     # resident
        ],
        out_specs=pl.BlockSpec((1, tb), lambda i: (0, i)),    # lane-dense output row
        compiler_params=pltpu.CompilerParams(
            dimension_semantics=("parallel",),                # megacore split on v7x
            vmem_limit_bytes=vmem_limit,
        ),
    )(img_t, lab2d, w1_img, w1e, w2_col)

    return out.reshape(b_pad)[:B].reshape(B, 1)


# ---------------------------------------------------------------------------
# Pure-JAX reference (same bf16 quantization of the img MXU operands).
# ---------------------------------------------------------------------------
def _reference_forward(img, labels, emb_table, w1, w2):
    B = img.shape[0]
    img2d = img.reshape(B, -1)
    dim = img2d.shape[1]
    emb = jnp.take(emb_table, labels, axis=0)
    h = (jnp.dot(img2d.astype(jnp.bfloat16), w1[:, :dim].astype(jnp.bfloat16).T,
                 preferred_element_type=jnp.float32)
         + jnp.dot(emb.astype(jnp.float32), w1[:, dim:].T))
    h = jnp.where(h > 0, h, 0.2 * h)
    logit = h @ w2.astype(jnp.float32).T
    return jax.nn.sigmoid(logit)


if __name__ == "__main__":
    # opt: n_classes=2, label_dim=8, dim=2 (2-D moon points), hidden_dim=32
    n_classes, label_dim, dim, hidden_dim = 2, 8, 2, 32
    B = 8

    key = jax.random.PRNGKey(0)
    k_img, k_lab, k_emb, k_w1, k_w2 = jax.random.split(key, 5)

    img = jax.random.normal(k_img, (B, dim), dtype=jnp.float32)
    labels = jax.random.randint(k_lab, (B,), 0, n_classes, dtype=jnp.int32)

    # Synthetic parameters, PyTorch layouts: Embedding (n_classes, label_dim),
    # Linear1 weight (hidden, in), Linear2 weight (1, hidden).
    emb_table = jax.random.normal(k_emb, (n_classes, label_dim), dtype=jnp.float32)
    in_dim = dim + label_dim
    w1 = (jax.random.uniform(k_w1, (hidden_dim, in_dim), dtype=jnp.float32) - 0.5) \
         * (2.0 / jnp.sqrt(in_dim))
    w2 = (jax.random.uniform(k_w2, (1, hidden_dim), dtype=jnp.float32) - 0.5) \
         * (2.0 / jnp.sqrt(hidden_dim))

    out = jax.block_until_ready(discriminator_moon_forward(img, labels, emb_table, w1, w2))
    ref = _reference_forward(img, labels, emb_table, w1, w2)

    assert out.shape == (B, 1)
    assert jnp.allclose(out, ref, atol=1e-4, rtol=1e-4), "mismatch vs reference"

    print("KERNEL_OK")
</pallas_src>

<mosaic_0001>
module attributes {stable_mosaic.version = 11 : i64} {
  func.func @_disc_kernel(%arg0: i32, %arg1: memref<2x128xbf16, #tpu.memory_space<vmem>>, %arg2: memref<1x128xi32, #tpu.memory_space<vmem>>, %arg3: memref<32x2xbf16, #tpu.memory_space<vmem>>, %arg4: memref<32x2xf32, #tpu.memory_space<vmem>>, %arg5: memref<32x1xf32, #tpu.memory_space<vmem>>, %arg6: memref<1x128xf32, #tpu.memory_space<vmem>>) attributes {dimension_semantics = [#tpu.dimension_semantics<parallel>], iteration_bounds = array<i64: 1>, scalar_prefetch = 0 : i64, scratch_operands = 0 : i64, tpu.core_type = #tpu.core_type<tc>, window_params = [{transform_indices = @transform_0, window_bounds = array<i64: 2, 128>}, {transform_indices = @transform_1, window_bounds = array<i64: 1, 128>}, {pipeline_mode = #tpu.pipeline_mode<synchronous>, transform_indices = @transform_2, window_bounds = array<i64: 32, 2>}, {pipeline_mode = #tpu.pipeline_mode<synchronous>, transform_indices = @transform_3, window_bounds = array<i64: 32, 2>}, {pipeline_mode = #tpu.pipeline_mode<synchronous>, transform_indices = @transform_4, window_bounds = array<i64: 32, 1>}, {transform_indices = @transform_5, window_bounds = array<i64: 1, 128>}]} {
    %c0 = arith.constant 0 : index
    %c0_0 = arith.constant 0 : index
    %0 = vector.load %arg3[%c0, %c0_0] : memref<32x2xbf16, #tpu.memory_space<vmem>>, vector<32x2xbf16>
    %c0_1 = arith.constant 0 : index
    %c0_2 = arith.constant 0 : index
    %1 = vector.load %arg1[%c0_1, %c0_2] : memref<2x128xbf16, #tpu.memory_space<vmem>>, vector<2x128xbf16>
    %cst = arith.constant dense<0.000000e+00> : vector<32x128xf32>
    %2 = tpu.matmul %0, %1, %cst {dimension_numbers = #tpu.dot_dimension_numbers<[1], [0], [0], [1], [0, 0, 1, 1], [], []>} : vector<32x2xbf16>, vector<2x128xbf16>, vector<32x128xf32> -> vector<32x128xf32>
    %c0_3 = arith.constant 0 : index
    %c0_4 = arith.constant 0 : index
    %3 = vector.load %arg2[%c0_3, %c0_4] : memref<1x128xi32, #tpu.memory_space<vmem>>, vector<1x128xi32>
    %c0_i32 = arith.constant 0 : i32
    %4 = vector.broadcast %c0_i32 : i32 to vector<1x128xi32>
    %5 = arith.cmpi eq, %3, %4 : vector<1x128xi32>
    %c0_5 = arith.constant 0 : index
    %c0_6 = arith.constant 0 : index
    %6 = vector.load %arg4[%c0_5, %c0_6] : memref<32x2xf32, #tpu.memory_space<vmem>>, vector<32x1xf32>
    %cst_7 = arith.constant 0.000000e+00 : f32
    %7 = vector.shape_cast %5 : vector<1x128xi1> to vector<1x128xi1>
    %8 = vector.broadcast %7 : vector<1x128xi1> to vector<32x128xi1>
    %9 = vector.shape_cast %6 : vector<32x1xf32> to vector<32x1xf32>
    %10 = vector.broadcast %9 : vector<32x1xf32> to vector<32x128xf32>
    %11 = vector.broadcast %cst_7 : f32 to vector<32x128xf32>
    %12 = arith.select %8, %10, %11 : vector<32x128xi1>, vector<32x128xf32>
    %c1_i32 = arith.constant 1 : i32
    %13 = vector.broadcast %c1_i32 : i32 to vector<1x128xi32>
    %14 = arith.cmpi eq, %3, %13 : vector<1x128xi32>
    %c0_8 = arith.constant 0 : index
    %c1 = arith.constant 1 : index
    %15 = vector.load %arg4[%c0_8, %c1] : memref<32x2xf32, #tpu.memory_space<vmem>>, vector<32x1xf32>
    %16 = vector.shape_cast %14 : vector<1x128xi1> to vector<1x128xi1>
    %17 = vector.broadcast %16 : vector<1x128xi1> to vector<32x128xi1>
    %18 = vector.shape_cast %15 : vector<32x1xf32> to vector<32x1xf32>
    %19 = vector.broadcast %18 : vector<32x1xf32> to vector<32x128xf32>
    %20 = arith.select %17, %19, %12 : vector<32x128xi1>, vector<32x128xf32>
    %21 = arith.addf %2, %20 : vector<32x128xf32>
    %cst_9 = arith.constant 0.000000e+00 : f32
    %22 = vector.broadcast %cst_9 : f32 to vector<32x128xf32>
    %23 = arith.cmpf ogt, %21, %22 : vector<32x128xf32>
    %cst_10 = arith.constant 2.000000e-01 : f32
    %24 = vector.broadcast %cst_10 : f32 to vector<32x128xf32>
    %25 = arith.mulf %24, %21 : vector<32x128xf32>
    %26 = arith.select %23, %21, %25 : vector<32x128xi1>, vector<32x128xf32>
    %c0_11 = arith.constant 0 : index
    %c0_12 = arith.constant 0 : index
    %27 = vector.load %arg5[%c0_11, %c0_12] : memref<32x1xf32, #tpu.memory_space<vmem>>, vector<32x1xf32>
    %28 = vector.broadcast %27 : vector<32x1xf32> to vector<32x128xf32>
    %29 = arith.mulf %26, %28 : vector<32x128xf32>
    %cst_13 = arith.constant dense<0.000000e+00> : vector<128xf32>
    %30 = vector.multi_reduction <add>, %29, %cst_13 [0] : vector<32x128xf32> to vector<128xf32>
    %31 = vector.shape_cast %30 : vector<128xf32> to vector<1x128xf32>
    %32 = math.absf %31 : vector<1x128xf32>
    %cst_14 = arith.constant 0.000000e+00 : f32
    %33 = vector.broadcast %cst_14 : f32 to vector<1x128xf32>
    %34 = arith.subf %33, %32 : vector<1x128xf32>
    %35 = math.exp %34 : vector<1x128xf32>
    %cst_15 = arith.constant 0.000000e+00 : f32
    %36 = vector.broadcast %cst_15 : f32 to vector<1x128xf32>
    %37 = arith.cmpf oge, %31, %36 : vector<1x128xf32>
    %cst_16 = arith.constant 1.000000e+00 : f32
    %38 = vector.broadcast %cst_16 : f32 to vector<1x128xf32>
    %39 = arith.addf %38, %35 : vector<1x128xf32>
    %cst_17 = arith.constant 1.000000e+00 : f32
    %40 = vector.broadcast %cst_17 : f32 to vector<1x128xf32>
    %41 = arith.divf %40, %39 : vector<1x128xf32>
    %cst_18 = arith.constant 1.000000e+00 : f32
    %42 = vector.broadcast %cst_18 : f32 to vector<1x128xf32>
    %43 = arith.addf %42, %35 : vector<1x128xf32>
    %44 = arith.divf %35, %43 : vector<1x128xf32>
    %45 = arith.select %37, %41, %44 : vector<1x128xi1>, vector<1x128xf32>
    %c0_19 = arith.constant 0 : index
    %c0_20 = arith.constant 0 : index
    %46 = vector.load %arg6[%c0_19, %c0_20] : memref<1x128xf32, #tpu.memory_space<vmem>>, vector<1x128xf32>
    tpu.vector_store %arg6[%c0_19, %c0_20], %45 {strides = array<i32>} : memref<1x128xf32, #tpu.memory_space<vmem>>, vector<1x128xf32>,
    return
  }
  func.func @transform_0(%arg0: i32) -> (i32, i32) {
    %c0_i32 = arith.constant 0 : i32
    %c0_i32_0 = arith.constant 0 : i32
    return %c0_i32, %arg0 : i32, i32
  }
  func.func @transform_1(%arg0: i32) -> (i32, i32) {
    %c0_i32 = arith.constant 0 : i32
    %c0_i32_0 = arith.constant 0 : i32
    return %c0_i32, %arg0 : i32, i32
  }
  func.func @transform_2(%arg0: i32) -> (i32, i32) {
    %c0_i32 = arith.constant 0 : i32
    %c0_i32_0 = arith.constant 0 : i32
    %c0_i32_1 = arith.constant 0 : i32
    return %c0_i32, %c0_i32_0 : i32, i32
  }
  func.func @transform_3(%arg0: i32) -> (i32, i32) {
    %c0_i32 = arith.constant 0 : i32
    %c0_i32_0 = arith.constant 0 : i32
    %c0_i32_1 = arith.constant 0 : i32
    return %c0_i32, %c0_i32_0 : i32, i32
  }
  func.func @transform_4(%arg0: i32) -> (i32, i32) {
    %c0_i32 = arith.constant 0 : i32
    %c0_i32_0 = arith.constant 0 : i32
    %c0_i32_1 = arith.constant 0 : i32
    return %c0_i32, %c0_i32_0 : i32, i32
  }
  func.func @transform_5(%arg0: i32) -> (i32, i32) {
    %c0_i32 = arith.constant 0 : i32
    %c0_i32_0 = arith.constant 0 : i32
    return %c0_i32, %arg0 : i32, i32
  }
}

</mosaic_0001>

<bundles_post_ra>
// kernel: discriminator_moon_forward.1
= control target key start
LH: loop header
LB: loop body
LE: loop exit
PB: predicated region body
PF: predicated region fallthrough
CT: control target
= control target key end

     0   :  { %vm100_vm0 = vcmask 1040384   ;;  %v225_v0 = vmov 1   ;;  %v226_v1 = vmov 0   ;;  %vm93_vm1 = vcmask 15360   ;;  %s320_s3 = inlined_call_operand.vmem [shape: f32[32,2], index: 3, kind: input, shape index: {}]   ;;  %s321_s0 = inlined_call_operand.vmem [shape: bf16[2,128], index: 0, kind: input, shape index: {}]   ;;  %s322_s2 = inlined_call_operand.vmem [shape: bf16[32,2], index: 2, kind: input, shape index: {}]   ;;  %s323_s4 = inlined_call_operand.vmem [shape: f32[32,1], index: 4, kind: input, shape index: {}]   ;;  %s324_s1 = inlined_call_operand.vmem [shape: s32[1,128], index: 1, kind: input, shape index: {}]   ;;  %s325_s5 = inlined_call_operand.vmem [shape: f32[1,128], index: 5, kind: output, shape index: {}]  }
   0x1   :  { %216 = vset.pattern.permute.xlu1 %v225_v0  ;;  %215 = vset.pattern.permute.xlu0 %v226_v1  ;;  %v28_v2 = vld [vmem:[%s320_s3] sm:$0xff]  ;;  %v211_v6 = vld [vmem:[%s322_s2 + $0x8] sm:$0xff]  ;;  %v30_v7 = vld [vmem:[%s320_s3 + $0x10] sm:$0xff] }
   0x2   :  { %v25_v3 = vld [vmem:[%s321_s0] sm:$0x1]  ;;  %64 = vperm.xlu1 %216, %v28_v2   ;;  %37 = vperm.xlu0 %215, %v28_v2   ;;  %v29_v8 = vld [vmem:[%s320_s3 + $0x8] sm:$0xff]  ;;  %v31_v9 = vld [vmem:[%s320_s3 + $0x18] sm:$0xff] }
   0x3   :  { %v102_v4 = vsel %vm100_vm0, %v25_v3, 0  ;;  %v210_v5 = vld [vmem:[%s322_s2] sm:$0xff]  ;;  %217 = vset.pattern.permute.xlu2 %v226_v1  ;;  %v136_v11 = vld [vmem:[%s323_s4 + $0x8] sm:$0xff]  ;;  %v137_v12 = vld [vmem:[%s323_s4 + $0x10] sm:$0xff] }
   0x4   :  { %111 = vmatpush.bf16.msra.mxu0 %v102_v4  ;;  %212 = vmatpush.bf16.msra.mxu1 %v102_v4  ;;  %v135_v10 = vld [vmem:[%s323_s4] sm:$0xff]  ;;  %v138_v13 = vld [vmem:[%s323_s4 + $0x18] sm:$0xff] }
   0x5   :  { %47 = vperm.xlu2 %217, %v30_v7   ;;  %v26_v14 = vld [vmem:[%s324_s1] sm:$0x1] }
   0x6   :  { %vm27_vm2 = vcmp.eq.s32.totalorder %v26_v14, 0  ;;  %vm59_vm3 = vcmp.eq.s32.totalorder %v26_v14, 1 }
   0x7   :  { %208 = vmatmul.msk.bf16.vlgmr.msra.gmra.mxu0 %vm93_vm1, %v210_v5  ;;  %209 = vmatmul.msk.bf16.vlgmr.msra.gmra.mxu1 %vm93_vm1, %v211_v6  ;;  %v32_v18 = vsel %vm27_vm2, 1, %v226_v1  ;;  %v60_v20 = vsel %vm59_vm3, 1, %v226_v1 }
   0x8   :  { %v33_v19 = vperm.slane %v32_v18, 0  ;;  %v61_v23 = vperm.slane %v60_v20, 0 }
   0xa   :  { %68 = vperm.xlu1 %216, %v29_v8   ;;  %42 = vperm.xlu0 %215, %v29_v8   ;;  %vm293_vm4 = vcmp.eq.s32.totalorder %v33_v19, 1  ;;  %vm299_vm5 = vcmp.eq.s32.totalorder %v61_v23, 1 }
   0xd   :  { %218 = vset.pattern.permute.xlu2 %v225_v0 }
   0xe   :  { %72 = vperm.xlu2 %218, %v30_v7  }
  0x12   :  { %76 = vperm.xlu1 %216, %v31_v9   ;;  %52 = vperm.xlu0 %215, %v31_v9  }
  0x16   :  { %219 = vset.pattern.permute.xlu2 %v226_v1 }
  0x17   :  { %141 = vperm.xlu2 %219, %v135_v10  }
  0x1a   :  { %220 = vset.pattern.permute.xlu1 %v226_v1  ;;  %146 = vperm.xlu0 %215, %v136_v11  }
  0x1b   :  { %151 = vperm.xlu1 %220, %v137_v12  }
  0x1f   :  { %156 = vperm.xlu2 %219, %v138_v13  }
  0x5f   :  { %v48_v17 = vpop.permute.xlu2 %47 }
  0x60   :  { %v57_v30 = vsel %vm293_vm4, %v48_v17, 0.0 }
  0x68   :  { %v73_v25 = vpop.permute.xlu2 %72 }
  0x69   :  { %v81_v36 = vsel %vm299_vm5, %v73_v25, %v57_v30 }
  0x71   :  { %v142_v40 = vpop.permute.xlu2 %141 }
  0x74   :  { %v65_v15 = vpop.permute.xlu1 %64  ;;  %v38_v16 = vpop.permute.xlu0 %37 }
  0x75   :  { %v55_v26 = vsel %vm293_vm4, %v38_v16, 0.0 }
  0x76   :  { %v79_v31 = vsel %vm299_vm5, %v65_v15, %v55_v26 }
  0x79   :  { %v157_v60 = vpop.permute.xlu2 %156 }
  0x7c   :  { %v69_v21 = vpop.permute.xlu1 %68  ;;  %v43_v22 = vpop.permute.xlu0 %42 }
  0x7d   :  { %v56_v35 = vsel %vm293_vm4, %v43_v22, 0.0 }
  0x7e   :  { %v80_v41 = vsel %vm299_vm5, %v69_v21, %v56_v35 }
  0x84   :  { %v113_v28 = vpop.f32.mrf.mxu0  ;;  %v118_v29 = vpop.f32.mrf.mxu1 }
  0x85   :  { %v53_v32 = vpop.permute.xlu0 %52  ;;  %v114_v33 = vadd.f32 %v113_v28, %v79_v31  ;;  %v77_v34 = vpop.permute.xlu1 %76  ;;  %v119_v38 = vadd.f32 %v118_v29, %v81_v36 }
  0x86   :  { %v58_v37 = vsel %vm293_vm4, %v53_v32, 0.0 }
  0x87   :  { %v127_v39 = vmul.f32 0.2, %v114_v33  ;;  %vm123_vm6 = vcmp.gt.f32.partialorder %v114_v33, 0.0  ;;  %v82_v43 = vsel %vm299_vm5, %v77_v34, %v58_v37  ;;  %v129_v47 = vmul.f32 0.2, %v119_v38 }
  0x88   :  { %vm125_vm9 = vcmp.gt.f32.partialorder %v119_v38, 0.0 }
  0x89   :  { %v131_v48 = vsel %vm123_vm6, %v114_v33, %v127_v39  ;;  %v133_v57 = vsel %vm125_vm9, %v119_v38, %v129_v47 }
  0x8a   :  { %v159_v54 = vmul.f32 %v142_v40, %v131_v48 }
  0x8c   :  { %v115_v42 = vpop.f32.mrf.mxu0  ;;  %v120_v44 = vpop.f32.mrf.mxu1 }
  0x8d   :  { %v116_v45 = vadd.f32 %v115_v42, %v80_v41  ;;  %v121_v46 = vadd.f32 %v120_v44, %v82_v43  ;;  %v147_v51 = vpop.permute.xlu0 %146  ;;  %v152_v53 = vpop.permute.xlu1 %151 }
  0x8e   :  { %v161_v59 = vmul.f32 %v152_v53, %v133_v57 }
  0x8f   :  { %v128_v49 = vmul.f32 0.2, %v116_v45  ;;  %v130_v50 = vmul.f32 0.2, %v121_v46  ;;  %vm124_vm7 = vcmp.gt.f32.partialorder %v116_v45, 0.0  ;;  %vm126_vm8 = vcmp.gt.f32.partialorder %v121_v46, 0.0 }
  0x91   :  { %v132_v52 = vsel %vm124_vm7, %v116_v45, %v128_v49  ;;  %v134_v56 = vsel %vm126_vm8, %v121_v46, %v130_v50 }
  0x92   :  { %v160_v55 = vmul.f32 %v147_v51, %v132_v52  ;;  %v162_v61 = vmul.f32 %v157_v60, %v134_v56 }
  0x94   :  { %v163_v58 = vadd.f32 %v160_v55, %v159_v54 }
  0x96   :  { %v164_v62 = vadd.f32 %v163_v58, %v161_v59 }
  0x98   :  { %v165_v63 = vadd.f32 %v164_v62, %v162_v61 }
  0x9a   :  { %v166_v0 = vrot.slane %v165_v63, 4 }
  0x9c   :  { %v167_v1 = vadd.f32 %v166_v0, %v165_v63 }
  0x9e   :  { %v168_v2 = vrot.slane %v167_v1, 2 }
  0xa0   :  { %v169_v3 = vadd.f32 %v168_v2, %v167_v1 }
  0xa2   :  { %v170_v4 = vrot.slane %v169_v3, 1 }
  0xa4   :  { %v171_v5 = vadd.f32 %v170_v4, %v169_v3 }
  0xa6   :  { %v172_v6 = vand.u32 2147483647, %v171_v5  ;;  %vm176_vm14 = vcmp.ge.f32.partialorder %v171_v5, 0.0 }
  0xa8   :  { %v173_v7 = vsub.f32 0.0, %v172_v6 }
  0xaa   :  { %v174_v8 = vmul.f32 1.442695, %v173_v7 }
  0xac   :  { %221 = vpow2.f32 %v174_v8 }
  0xb2   :  { %v222_v9 = vpop.eup %221 }
  0xb3   :  { %v177_v10 = vadd.f32 1.0, %v222_v9 }
  0xb5   :  { %223 = vrcp.f32 %v177_v10  ;;  %v189_v14 = vand.u32 2147483648, %v177_v10  ;;  %v187_v16 = vand.u32 2147483647, %v177_v10  ;;  %vm183_vm11 = vweird.f32 %v177_v10 }
  0xb7   :  { %v190_v18 = vor.u32 1.1754944e-38, %v189_v14  ;;  %vm188_vm13 = vcmp.eq.f32.partialorder %v187_v16, 8.507059e+37 }
  0xbb   :  { %v224_v11 = vpop.eup %223 }
  0xbc   :  { %v179_v12 = vmul.f32 %v224_v11, %v177_v10  ;;  %vm184_vm10 = vweird.f32 %v224_v11 }
  0xbd   :  { %vm185_vm12 = vmor %vm183_vm11, %vm184_vm10 }
  0xbe   :  { %v180_v13 = vsub.f32 1.0, %v179_v12 }
  0xc0   :  { %v181_v15 = vmul.f32 %v224_v11, %v180_v13 }
  0xc2   :  { %v182_v17 = vadd.f32 %v224_v11, %v181_v15 }
  0xc4   :  { %v186_v19 = vsel %vm185_vm12, %v224_v11, %v182_v17 }
  0xc5   :  { %v191_v20 = vsel %vm188_vm13, %v190_v18, %v186_v19 }
  0xc6   :  { %v193_v21 = vmul.f32 %v222_v9, %v191_v20 }
  0xc8   :  { %v194_v22 = vsel %vm176_vm14, %v191_v20, %v193_v21 }
  0xc9   :  { %195 = vst [vmem:[%s325_s5] sm:$0x1] %v194_v22 }

</bundles_post_ra>
